<compile_context>
chip_gen: v6e
topology: v6e:2x2x1
jax: 0.10.0
libtpu: 0.0.40
codegen_flags: <defaults>
</compile_context>

<pallas_src>
import jax
import jax.numpy as jnp
from jax.experimental import pallas as pl
from jax.experimental.pallas import tpu as pltpu


LANE = 128           # hidden feature dims are padded to lane width
BATCH_ALIGN = 16     # bf16 sublane packing: 16-row batch tiles


def _round_up(n, m):
    return ((n + m - 1) // m) * m


def fused_mlp_kernel(x_ref,
                     w1_ref, b1_ref,
                     w2_ref, b2_ref,
                     w3_ref, b3_ref,
                     w4_ref, b4_ref,
                     o_ref):
    """One batch tile of (Linear + folded-BN + ReLU) x3 -> Linear (eval mode).

    x arrives f32 and is cast to bf16 in-kernel (no wrapper pad/cast pass);
    weights are bf16 VMEM-resident slabs; matmuls accumulate f32 on the MXU.
    Dropout is identity in eval mode.
    """
    h = x_ref[...].astype(jnp.bfloat16)
    h = jnp.dot(h, w1_ref[...], preferred_element_type=jnp.float32) + b1_ref[...]
    h = jnp.maximum(h, 0.0).astype(jnp.bfloat16)
    h = jnp.dot(h, w2_ref[...], preferred_element_type=jnp.float32) + b2_ref[...]
    h = jnp.maximum(h, 0.0).astype(jnp.bfloat16)
    h = jnp.dot(h, w3_ref[...], preferred_element_type=jnp.float32) + b3_ref[...]
    h = jnp.maximum(h, 0.0).astype(jnp.bfloat16)
    out = jnp.dot(h, w4_ref[...], preferred_element_type=jnp.float32) + b4_ref[...]
    o_ref[...] = out.astype(o_ref.dtype)


def init_raw_params(key, input_dim, hidden_dim, output_dim):
    """PyTorch-like raw parameters: weight (in,out) == torch weight.T, bias,
    and eval-mode BatchNorm stats for the first three layers."""
    h1 = hidden_dim
    h2 = int(hidden_dim * 0.75)
    h3 = int(hidden_dim * 0.5)
    layer_dims = [(input_dim, h1), (h1, h2), (h2, h3), (h3, output_dim)]

    keys = jax.random.split(key, 6 * len(layer_dims))
    raw = {}
    for i, (din, dout) in enumerate(layer_dims, start=1):
        kw, kb, kg, kbe, km, kv = keys[(i - 1) * 6:(i - 1) * 6 + 6]
        bound = 1.0 / (din ** 0.5)
        raw[f"w{i}"] = jax.random.uniform(kw, (din, dout), jnp.float32, -bound, bound)
        raw[f"b{i}"] = jax.random.uniform(kb, (dout,), jnp.float32, -bound, bound)
        if i <= 3:
            raw[f"gamma{i}"] = 1.0 + 0.1 * jax.random.uniform(kg, (dout,), jnp.float32)
            raw[f"beta{i}"] = 0.1 * jax.random.normal(kbe, (dout,), jnp.float32)
            raw[f"mean{i}"] = 0.1 * jax.random.normal(km, (dout,), jnp.float32)
            raw[f"var{i}"] = 1.0 + 0.1 * jax.random.uniform(kv, (dout,), jnp.float32)
    return raw


def prepare_params(raw, eps=1e-5):
    """Fold eval-mode BN into weights/biases; pad only the *hidden* feature dims
    to 128 (input/output keep their true sizes); cast weights to bf16."""
    dims = [raw["w1"].shape[0]] + [raw[f"w{i}"].shape[1] for i in range(1, 5)]
    # Interface dims seen by the kernel: hidden dims lane-padded, in/out true.
    io = [dims[0]] + [_round_up(d, LANE) for d in dims[1:4]] + [dims[4]]
    prep = {"dims": dims, "io": io}
    for i in range(1, 5):
        w = raw[f"w{i}"]                       # (din, dout) f32
        b = raw[f"b{i}"]                       # (dout,)     f32
        if i <= 3:
            scale = raw[f"gamma{i}"] / jnp.sqrt(raw[f"var{i}"] + eps)
            shift = raw[f"beta{i}"] - raw[f"mean{i}"] * scale
            w = w * scale[None, :]
            b = b * scale + shift
        din_p, dout_p = io[i - 1], io[i]
        w = jnp.pad(w, ((0, din_p - w.shape[0]), (0, dout_p - w.shape[1])))
        b = jnp.pad(b, (0, dout_p - b.shape[0]))
        prep[f"w{i}"] = w.astype(jnp.bfloat16)
        prep[f"b{i}"] = b.reshape(1, dout_p).astype(jnp.float32)
    return prep


def _batch_tile_map(i):     # x / out: tiled along batch
    return (i, 0)


def _resident_map(i):       # weights / biases: same block every step -> stay in VMEM
    return (0, 0)


def fiber_optic_fnn3_forward(x, prep, *, batch_tile=None):
    """Fused FiberOpticFNN3 eval forward.  x: (B, input_dim) f32."""
    B, din = x.shape
    dims, io = prep["dims"], prep["io"]
    assert din == dims[0], "input feature dim mismatch"

    if batch_tile is None:
        # >=2 grid steps when possible (v7x megacore sharding), tiles capped near
        # 512 rows, and sized from cdiv(B, n_tiles) so awkward batch sizes aren't
        # over-padded; 16-row alignment for clean bf16 sublane packing.
        n_tiles = max(2, pl.cdiv(B, 512))
        batch_tile = _round_up(pl.cdiv(B, n_tiles), BATCH_ALIGN)
    TB = batch_tile
    B_pad = _round_up(B, TB)
    grid = (B_pad // TB,)

    # Only pad the batch dim, and only when the tile doesn't divide B
    # (no feature pad, no dtype cast pass: bf16 cast happens in-kernel).
    x_in = x if B_pad == B else jnp.pad(x, ((0, B_pad - B), (0, 0)))

    operands = [x_in]
    in_specs = [pl.BlockSpec((TB, din), _batch_tile_map)]
    for k in range(1, 5):
        w, b = prep[f"w{k}"], prep[f"b{k}"]
        operands.extend([w, b])
        in_specs.append(pl.BlockSpec(w.shape, _resident_map))
        in_specs.append(pl.BlockSpec(b.shape, _resident_map))

    # Output block last dim = true output_dim (full-array dim, exempt from 128
    # rule) -> ~32x less writeback than a 128-padded f32 stream, no column slice.
    out_specs = pl.BlockSpec((TB, dims[4]), _batch_tile_map)

    flops = 2 * B_pad * sum(io[k] * io[k + 1] for k in range(4))
    bytes_accessed = int(x_in.size) * x_in.dtype.itemsize
    bytes_accessed += sum(int(op.size) * op.dtype.itemsize for op in operands[1:])
    bytes_accessed += B_pad * dims[4] * 4
    cost = pl.CostEstimate(flops=int(flops), transcendentals=0,
                           bytes_accessed=int(bytes_accessed))

    # VMEM budget: double-buffered x/out tiles + resident weights/biases (x2 for
    # default double-buffering) + f32 layer intermediates + headroom.
    weight_bytes = sum(int(prep[f"w{k}"].size) * prep[f"w{k}"].dtype.itemsize
                       + int(prep[f"b{k}"].size) * prep[f"b{k}"].dtype.itemsize
                       for k in range(1, 5))
    stream_bytes = 2 * TB * din * 4 + 2 * TB * dims[4] * 4
    scratch_bytes = 8 * TB * max(io) * 4
    needed = 2 * weight_bytes + stream_bytes + scratch_bytes + (4 << 20)
    vmem_limit = int(min(max(needed, 32 << 20), 64 << 20))

    out_p = pl.pallas_call(
        fused_mlp_kernel,
        out_shape=jax.ShapeDtypeStruct((B_pad, dims[4]), jnp.float32),
        grid=grid,
        in_specs=in_specs,
        out_specs=out_specs,
        compiler_params=pltpu.CompilerParams(
            dimension_semantics=("parallel",),
            vmem_limit_bytes=vmem_limit),
        cost_estimate=cost,
    )(*operands)

    return out_p if B_pad == B else out_p[:B]


def reference_raw_f32(x, raw, eps=1e-5):
    """Pure-f32 reference of the original module (Linear -> BN(eval) -> ReLU)x3 -> Linear."""
    h = x
    for i in range(1, 4):
        h = h @ raw[f"w{i}"] + raw[f"b{i}"]
        h = (h - raw[f"mean{i}"]) / jnp.sqrt(raw[f"var{i}"] + eps)
        h = h * raw[f"gamma{i}"] + raw[f"beta{i}"]
        h = jnp.maximum(h, 0.0)
    return h @ raw["w4"] + raw["b4"]


def reference_prepared_bf16(x, prep):
    """Mirror of the kernel's numerics (folded BN, bf16 operands, f32 accumulation)."""
    h = x.astype(jnp.bfloat16)
    for i in range(1, 4):
        h = jnp.dot(h, prep[f"w{i}"], preferred_element_type=jnp.float32) + prep[f"b{i}"]
        h = jnp.maximum(h, 0.0).astype(jnp.bfloat16)
    return jnp.dot(h, prep["w4"], preferred_element_type=jnp.float32) + prep["b4"]


if __name__ == "__main__":
    # Small shapes consistent with the module's forward: x is (batch, input_dim).
    batch, input_dim, hidden_dim, output_dim = 8, 32, 32, 4
    # TODO(synk): training-mode Dropout / batch-statistics BatchNorm are not
    # implemented; this kernel covers the eval-mode forward pass only.

    key = jax.random.PRNGKey(0)
    kx, kp = jax.random.split(key)
    x = jax.random.normal(kx, (batch, input_dim), jnp.float32)

    raw = init_raw_params(kp, input_dim, hidden_dim, output_dim)
    prep = prepare_params(raw)

    out = fiber_optic_fnn3_forward(x, prep)
    out = jax.block_until_ready(out)
    assert out.shape == (batch, output_dim)

    # Tight check vs a reference that mirrors the kernel's bf16/f32 numerics.
    ref_exact = reference_prepared_bf16(x, prep)
    assert jnp.allclose(out, ref_exact, atol=2e-3, rtol=2e-3), \
        "kernel mismatch vs bf16-mirrored reference"

    # Loose check vs the pure-f32 original-module math (bf16 rounding tolerance).
    ref_f32 = reference_raw_f32(x, raw)
    assert jnp.allclose(out, ref_f32, atol=5e-2, rtol=5e-2), \
        "kernel mismatch vs f32 reference"

    print("KERNEL_OK")
</pallas_src>

<mosaic_0001>
module attributes {stable_mosaic.version = 11 : i64} {
  func.func @fused_mlp_kernel(%arg0: i32, %arg1: memref<16x32xf32, #tpu.memory_space<vmem>>, %arg2: memref<32x128xbf16, #tpu.memory_space<vmem>>, %arg3: memref<1x128xf32, #tpu.memory_space<vmem>>, %arg4: memref<128x128xbf16, #tpu.memory_space<vmem>>, %arg5: memref<1x128xf32, #tpu.memory_space<vmem>>, %arg6: memref<128x128xbf16, #tpu.memory_space<vmem>>, %arg7: memref<1x128xf32, #tpu.memory_space<vmem>>, %arg8: memref<128x4xbf16, #tpu.memory_space<vmem>>, %arg9: memref<1x4xf32, #tpu.memory_space<vmem>>, %arg10: memref<16x4xf32, #tpu.memory_space<vmem>>) attributes {dimension_semantics = [#tpu.dimension_semantics<parallel>], iteration_bounds = array<i64: 1>, scalar_prefetch = 0 : i64, scratch_operands = 0 : i64, tpu.core_type = #tpu.core_type<tc>, window_params = [{transform_indices = @transform_0, window_bounds = array<i64: 16, 32>}, {pipeline_mode = #tpu.pipeline_mode<synchronous>, transform_indices = @transform_1, window_bounds = array<i64: 32, 128>}, {pipeline_mode = #tpu.pipeline_mode<synchronous>, transform_indices = @transform_2, window_bounds = array<i64: 1, 128>}, {pipeline_mode = #tpu.pipeline_mode<synchronous>, transform_indices = @transform_3, window_bounds = array<i64: 128, 128>}, {pipeline_mode = #tpu.pipeline_mode<synchronous>, transform_indices = @transform_4, window_bounds = array<i64: 1, 128>}, {pipeline_mode = #tpu.pipeline_mode<synchronous>, transform_indices = @transform_5, window_bounds = array<i64: 128, 128>}, {pipeline_mode = #tpu.pipeline_mode<synchronous>, transform_indices = @transform_6, window_bounds = array<i64: 1, 128>}, {pipeline_mode = #tpu.pipeline_mode<synchronous>, transform_indices = @transform_7, window_bounds = array<i64: 128, 4>}, {pipeline_mode = #tpu.pipeline_mode<synchronous>, transform_indices = @transform_8, window_bounds = array<i64: 1, 4>}, {transform_indices = @transform_9, window_bounds = array<i64: 16, 4>}]} {
    %c0 = arith.constant 0 : index
    %c0_0 = arith.constant 0 : index
    %0 = vector.load %arg1[%c0, %c0_0] : memref<16x32xf32, #tpu.memory_space<vmem>>, vector<16x32xf32>
    %1 = arith.truncf %0 : vector<16x32xf32> to vector<16x32xbf16>
    %c0_1 = arith.constant 0 : index
    %c0_2 = arith.constant 0 : index
    %2 = vector.load %arg2[%c0_1, %c0_2] : memref<32x128xbf16, #tpu.memory_space<vmem>>, vector<32x128xbf16>
    %cst = arith.constant dense<0.000000e+00> : vector<16x128xf32>
    %3 = tpu.matmul %1, %2, %cst {dimension_numbers = #tpu.dot_dimension_numbers<[1], [0], [0], [1], [0, 0, 1, 1], [], []>} : vector<16x32xbf16>, vector<32x128xbf16>, vector<16x128xf32> -> vector<16x128xf32>
    %c0_3 = arith.constant 0 : index
    %c0_4 = arith.constant 0 : index
    %4 = vector.load %arg3[%c0_3, %c0_4] : memref<1x128xf32, #tpu.memory_space<vmem>>, vector<1x128xf32>
    %5 = vector.broadcast %4 : vector<1x128xf32> to vector<16x128xf32>
    %6 = arith.addf %3, %5 : vector<16x128xf32>
    %cst_5 = arith.constant 0.000000e+00 : f32
    %7 = vector.broadcast %cst_5 : f32 to vector<16x128xf32>
    %8 = arith.maximumf %6, %7 : vector<16x128xf32>
    %9 = arith.truncf %8 : vector<16x128xf32> to vector<16x128xbf16>
    %c0_6 = arith.constant 0 : index
    %c0_7 = arith.constant 0 : index
    %10 = vector.load %arg4[%c0_6, %c0_7] : memref<128x128xbf16, #tpu.memory_space<vmem>>, vector<128x128xbf16>
    %cst_8 = arith.constant dense<0.000000e+00> : vector<16x128xf32>
    %11 = tpu.matmul %9, %10, %cst_8 {dimension_numbers = #tpu.dot_dimension_numbers<[1], [0], [0], [1], [0, 0, 1, 1], [], []>} : vector<16x128xbf16>, vector<128x128xbf16>, vector<16x128xf32> -> vector<16x128xf32>
    %c0_9 = arith.constant 0 : index
    %c0_10 = arith.constant 0 : index
    %12 = vector.load %arg5[%c0_9, %c0_10] : memref<1x128xf32, #tpu.memory_space<vmem>>, vector<1x128xf32>
    %13 = vector.broadcast %12 : vector<1x128xf32> to vector<16x128xf32>
    %14 = arith.addf %11, %13 : vector<16x128xf32>
    %cst_11 = arith.constant 0.000000e+00 : f32
    %15 = vector.broadcast %cst_11 : f32 to vector<16x128xf32>
    %16 = arith.maximumf %14, %15 : vector<16x128xf32>
    %17 = arith.truncf %16 : vector<16x128xf32> to vector<16x128xbf16>
    %c0_12 = arith.constant 0 : index
    %c0_13 = arith.constant 0 : index
    %18 = vector.load %arg6[%c0_12, %c0_13] : memref<128x128xbf16, #tpu.memory_space<vmem>>, vector<128x128xbf16>
    %cst_14 = arith.constant dense<0.000000e+00> : vector<16x128xf32>
    %19 = tpu.matmul %17, %18, %cst_14 {dimension_numbers = #tpu.dot_dimension_numbers<[1], [0], [0], [1], [0, 0, 1, 1], [], []>} : vector<16x128xbf16>, vector<128x128xbf16>, vector<16x128xf32> -> vector<16x128xf32>
    %c0_15 = arith.constant 0 : index
    %c0_16 = arith.constant 0 : index
    %20 = vector.load %arg7[%c0_15, %c0_16] : memref<1x128xf32, #tpu.memory_space<vmem>>, vector<1x128xf32>
    %21 = vector.broadcast %20 : vector<1x128xf32> to vector<16x128xf32>
    %22 = arith.addf %19, %21 : vector<16x128xf32>
    %cst_17 = arith.constant 0.000000e+00 : f32
    %23 = vector.broadcast %cst_17 : f32 to vector<16x128xf32>
    %24 = arith.maximumf %22, %23 : vector<16x128xf32>
    %25 = arith.truncf %24 : vector<16x128xf32> to vector<16x128xbf16>
    %c0_18 = arith.constant 0 : index
    %c0_19 = arith.constant 0 : index
    %26 = vector.load %arg8[%c0_18, %c0_19] : memref<128x4xbf16, #tpu.memory_space<vmem>>, vector<128x4xbf16>
    %cst_20 = arith.constant dense<0.000000e+00> : vector<16x4xf32>
    %27 = tpu.matmul %25, %26, %cst_20 {dimension_numbers = #tpu.dot_dimension_numbers<[1], [0], [0], [1], [0, 0, 1, 1], [], []>} : vector<16x128xbf16>, vector<128x4xbf16>, vector<16x4xf32> -> vector<16x4xf32>
    %c0_21 = arith.constant 0 : index
    %c0_22 = arith.constant 0 : index
    %28 = vector.load %arg9[%c0_21, %c0_22] : memref<1x4xf32, #tpu.memory_space<vmem>>, vector<1x4xf32>
    %29 = vector.broadcast %28 : vector<1x4xf32> to vector<16x4xf32>
    %30 = arith.addf %27, %29 : vector<16x4xf32>
    %c0_23 = arith.constant 0 : index
    %c0_24 = arith.constant 0 : index
    %31 = vector.load %arg10[%c0_23, %c0_24] : memref<16x4xf32, #tpu.memory_space<vmem>>, vector<16x4xf32>
    tpu.vector_store %arg10[%c0_23, %c0_24], %30 {strides = array<i32>} : memref<16x4xf32, #tpu.memory_space<vmem>>, vector<16x4xf32>,
    return
  }
  func.func @transform_0(%arg0: i32) -> (i32, i32) {
    %c0_i32 = arith.constant 0 : i32
    %c0_i32_0 = arith.constant 0 : i32
    return %arg0, %c0_i32 : i32, i32
  }
  func.func @transform_1(%arg0: i32) -> (i32, i32) {
    %c0_i32 = arith.constant 0 : i32
    %c0_i32_0 = arith.constant 0 : i32
    %c0_i32_1 = arith.constant 0 : i32
    return %c0_i32, %c0_i32_0 : i32, i32
  }
  func.func @transform_2(%arg0: i32) -> (i32, i32) {
    %c0_i32 = arith.constant 0 : i32
    %c0_i32_0 = arith.constant 0 : i32
    %c0_i32_1 = arith.constant 0 : i32
    return %c0_i32, %c0_i32_0 : i32, i32
  }
  func.func @transform_3(%arg0: i32) -> (i32, i32) {
    %c0_i32 = arith.constant 0 : i32
    %c0_i32_0 = arith.constant 0 : i32
    %c0_i32_1 = arith.constant 0 : i32
    return %c0_i32, %c0_i32_0 : i32, i32
  }
  func.func @transform_4(%arg0: i32) -> (i32, i32) {
    %c0_i32 = arith.constant 0 : i32
    %c0_i32_0 = arith.constant 0 : i32
    %c0_i32_1 = arith.constant 0 : i32
    return %c0_i32, %c0_i32_0 : i32, i32
  }
  func.func @transform_5(%arg0: i32) -> (i32, i32) {
    %c0_i32 = arith.constant 0 : i32
    %c0_i32_0 = arith.constant 0 : i32
    %c0_i32_1 = arith.constant 0 : i32
    return %c0_i32, %c0_i32_0 : i32, i32
  }
  func.func @transform_6(%arg0: i32) -> (i32, i32) {
    %c0_i32 = arith.constant 0 : i32
    %c0_i32_0 = arith.constant 0 : i32
    %c0_i32_1 = arith.constant 0 : i32
    return %c0_i32, %c0_i32_0 : i32, i32
  }
  func.func @transform_7(%arg0: i32) -> (i32, i32) {
    %c0_i32 = arith.constant 0 : i32
    %c0_i32_0 = arith.constant 0 : i32
    %c0_i32_1 = arith.constant 0 : i32
    return %c0_i32, %c0_i32_0 : i32, i32
  }
  func.func @transform_8(%arg0: i32) -> (i32, i32) {
    %c0_i32 = arith.constant 0 : i32
    %c0_i32_0 = arith.constant 0 : i32
    %c0_i32_1 = arith.constant 0 : i32
    return %c0_i32, %c0_i32_0 : i32, i32
  }
  func.func @transform_9(%arg0: i32) -> (i32, i32) {
    %c0_i32 = arith.constant 0 : i32
    %c0_i32_0 = arith.constant 0 : i32
    return %arg0, %c0_i32 : i32, i32
  }
}

</mosaic_0001>

<bundles_post_ra>
// kernel: tpu_custom_call.1
= control target key start
LH: loop header
LB: loop body
LE: loop exit
PB: predicated region body
PF: predicated region fallthrough
CT: control target
= control target key end

     0   :  { %14 = vsyncpa [#allocation3], 0  ;;  %s895_s0 = inlined_call_operand.hbm [shape: f32[16,32], index: 0, kind: input, shape index: {}]   ;;  %s896_s1 = inlined_call_operand.hbm [shape: bf16[32,128], index: 1, kind: input, shape index: {}]   ;;  %s897_s2 = inlined_call_operand.vmem [shape: f32[1,128], index: 2, kind: input, shape index: {}]   ;;  %s898_s3 = inlined_call_operand.vmem [shape: bf16[128,128], index: 3, kind: input, shape index: {}]   ;;  %s899_s4 = inlined_call_operand.vmem [shape: f32[1,128], index: 4, kind: input, shape index: {}]   ;;  %s900_s5 = inlined_call_operand.hbm [shape: bf16[128,128], index: 5, kind: input, shape index: {}]   ;;  %s901_s6 = inlined_call_operand.vmem [shape: f32[1,128], index: 6, kind: input, shape index: {}]   ;;  %s902_s7 = inlined_call_operand.vmem [shape: bf16[128,4], index: 7, kind: input, shape index: {}]   ;;  %s903_s8 = inlined_call_operand.vmem [shape: f32[1,4], index: 8, kind: input, shape index: {}]   ;;  %s904_s9 = inlined_call_operand.vmem [shape: f32[16,4], index: 9, kind: output, shape index: {}]  }
   0x1   :  { %15 = vsyncpa [#allocation5], 0  ;;  %s727_s30 = smov [#allocation4]  }
   0x2   :  { %s33_s10 = sshll.u32 %s727_s30, 4  ;;  %s34_s10 = int_to_ptr.vmem [resolvable:$true] %s33_s10 }
   0x3   :  { %s671_s11 = scalar_lea.vmem %s34_s10, 256  ;;  %p676_p1 = scmp.lt.s32.totalorder %s34_s10, %s34_s10 }
   0x4   :  { %p672_p0 = scmp.ne.s32.totalorder %s34_s10, %s671_s11  ;;  %p677_p2 = scmp.lt.s32.totalorder %s671_s11, %s671_s11 }
   0x6   :  { %p678_p3 = por %p677_p2, %p676_p1 }
   0x8   :  { %p679_p4 = pnand %p678_p3, %p672_p0 }
   0xa   :  { %682 = shalt.err (!%p679_p4)
}
   0xb   :  { %s728_s12 = smov 64   ;;  %s729_s13 = smov 4  }
   0xc   :  { %39 = dma.hbm_to_vmem [thread:$0]  %s896_s1, 256, %s34_s10, [#allocation5], %s728_s12, %s728_s12, %s729_s13  }
   0xd   :  { %s730_s16 = smov [#allocation2]  }
   0xe   :  { %s21_s17 = sshll.u32 %s730_s16, 4  ;;  %s22_s17 = int_to_ptr.vmem [resolvable:$true] %s21_s17 }
   0xf   :  { %s691_s18 = scalar_lea.vmem %s22_s17, 256  ;;  %p696_p6 = scmp.lt.s32.totalorder %s22_s17, %s22_s17 }
  0x10   :  { %p692_p5 = scmp.ne.s32.totalorder %s22_s17, %s691_s18  ;;  %p697_p7 = scmp.lt.s32.totalorder %s691_s18, %s691_s18 }
  0x12   :  { %p698_p8 = por %p697_p7, %p696_p6 }
  0x14   :  { %p699_p9 = pnand %p698_p8, %p692_p5 }
  0x16   :  { %702 = shalt.err (!%p699_p9)
}
  0x17   :  { %s731_s19 = smov 128   ;;  %s732_s20 = smov 8  }
  0x18   :  { %27 = dma.hbm_to_vmem [thread:$0]  %s895_s0, 256, %s22_s17, [#allocation3], %s731_s19, %s731_s19, %s732_s20  }
  0x19   :  { %s733_s23 = smov [#allocation6]  }
  0x1a   :  { %s51_s24 = sshll.u32 %s733_s23, 4  ;;  %s52_s24 = int_to_ptr.vmem [resolvable:$true] %s51_s24 }
  0x1b   :  { %s711_s1 = scalar_lea.vmem %s52_s24, 1024  ;;  %p716_p11 = scmp.lt.s32.totalorder %s52_s24, %s52_s24 }
  0x1c   :  { %p712_p10 = scmp.ne.s32.totalorder %s52_s24, %s711_s1  ;;  %p717_p12 = scmp.lt.s32.totalorder %s711_s1, %s711_s1 }
  0x1e   :  { %p718_p13 = por %p717_p12, %p716_p11 }
  0x20   :  { %p719_p0 = pnand %p718_p13, %p712_p10 }
  0x22   :  { %722 = shalt.err (!%p719_p0)
}
  0x23   :  { %57 = dma.hbm_to_vmem [thread:$0]  %s900_s5, 1024, %s52_s24, [#allocation5], %s728_s12, %s728_s12, %s729_s13  }
  0x24   :  { %723 = dma.done.wait [#allocation3], 256  }
  0x25   :  { %724 = vsyncadd [#allocation3], 4294967040 }
  0x26   :  { %725 = dma.done.wait [#allocation5], 1280  }
  0x27   :  { %726 = vsyncadd [#allocation5], 4294966016  ;;  %v734_v0 = vmov 0.0   ;;  %vm735_vm0 = vmmov 0   ;;  %v637_v1 = vld [vmem:[#allocation4 + $0x8] sm:$0xff]   ;;  %v638_v2 = vld [vmem:[#allocation4] sm:$0xff]  }
  0x28   :  { %560 = vmatprep.subr.bf16.mxu0 %v734_v0  ;;  %564 = vmatprep.mubr.msk.bf16.mxu0 %vm735_vm0, %v734_v0  ;;  %v74_v3 = vld [vmem:[#allocation2] sm:$0xff]  ;;  %v75_v4 = vld [vmem:[#allocation2 + $0x8] sm:$0xff]  ;;  %v639_v5 = vld [vmem:[%s898_s3 + $0x38] sm:$0xff]   ;;  %vm100_vm1 = vcmask 261120   ;;  %vm490_vm2 = vcmask 31744  }
  0x29   :  { %568 = vmatprep.subr.bf16.mxu1 %v734_v0  ;;  %584 = vmatprep.mubr.msk.bf16.mxu1 %vm735_vm0, %v734_v0  ;;  %v76_v6 = vpack.c.bf16 %v75_v4, %v74_v3  ;;  %v640_v7 = vld [vmem:[%s898_s3 + $0x30] sm:$0xff]   ;;  %v641_v8 = vld [vmem:[%s898_s3 + $0x28] sm:$0xff]   ;;  %v642_v9 = vld [vmem:[%s898_s3 + $0x20] sm:$0xff]  }
  0x2a   :  { %561 = vmatpush3.bf16.msra.mxu0 %v637_v1  ;;  %569 = vmatpush3.bf16.msra.mxu1 %v639_v5  ;;  %v643_v10 = vld [vmem:[%s898_s3 + $0x18] sm:$0xff]   ;;  %v644_v11 = vld [vmem:[%s898_s3 + $0x10] sm:$0xff]   ;;  %v645_v12 = vld [vmem:[%s898_s3 + $0x8] sm:$0xff]  }
  0x2b   :  { %562 = vmatprep.subr.bf16.mxu0 %v734_v0  ;;  %570 = vmatprep.subr.bf16.mxu1 %v734_v0  ;;  %v646_v13 = vld [vmem:[%s898_s3] sm:$0xff]   ;;  %v647_v14 = vld [vmem:[#allocation6 + $0x38] sm:$0xff]   ;;  %v648_v15 = vld [vmem:[#allocation6 + $0x30] sm:$0xff]  }
  0x2c   :  { %v649_v16 = vld [vmem:[#allocation6 + $0x28] sm:$0xff]   ;;  %v650_v17 = vld [vmem:[#allocation6 + $0x20] sm:$0xff]   ;;  %v651_v18 = vld [vmem:[#allocation6 + $0x18] sm:$0xff]  }
  0x2d   :  { %v499_v19 = vld [vmem:[%s897_s2] ss:$0 sm:$0xff]  ;;  %v652_v29 = vld [vmem:[#allocation6 + $0x10] sm:$0xff]   ;;  %v653_v30 = vld [vmem:[#allocation6 + $0x8] sm:$0xff]  }
  0x2e   :  { %563 = vmatpush3.bf16.msra.mxu0 %v638_v2  ;;  %571 = vmatpush3.bf16.msra.mxu1 %v640_v7  ;;  %v654_v31 = vld [vmem:[#allocation6] sm:$0xff]   ;;  %v655_v32 = vld [vmem:[%s902_s7 + $0x38] sm:$0xff]   ;;  %v656_v33 = vld [vmem:[%s902_s7 + $0x30] sm:$0xff]  }
  0x2f   :  { %588 = vmatprep.subr.bf16.mxu0 %v734_v0  ;;  %572 = vmatprep.subr.bf16.mxu1 %v734_v0  ;;  %v657_v34 = vld [vmem:[%s902_s7 + $0x28] sm:$0xff]   ;;  %v658_v35 = vld [vmem:[%s902_s7 + $0x20] sm:$0xff]   ;;  %v659_v36 = vld [vmem:[%s902_s7 + $0x18] sm:$0xff]  }
  0x30   :  { %v503_v37 = vld [vmem:[%s899_s4] ss:$0 sm:$0xff]  ;;  %v660_v47 = vld [vmem:[%s902_s7 + $0x10] sm:$0xff]   ;;  %v661_v48 = vld [vmem:[%s902_s7 + $0x8] sm:$0xff]  }
  0x31   :  { %565 = vmatmul.mubr.msk.bf16.vlgmr.msra.gmra.mxu0 %vm100_vm1, %v76_v6  ;;  %v662_v49 = vld [vmem:[%s902_s7] sm:$0xff]  }
  0x32   :  { %604 = vmatprep.mubr.msk.bf16.mxu0 %vm735_vm0, %v734_v0  ;;  %573 = vmatpush3.bf16.msra.mxu1 %v641_v8  ;;  %v512_v50 = vld [vmem:[%s901_s6] ss:$0 sm:$0xff] }
  0x33   :  { %574 = vmatprep.subr.bf16.mxu1 %v734_v0  ;;  %589 = vmatpush3.bf16.msra.mxu0 %v647_v14  ;;  %v521_v60 = vld [vmem:[%s903_s8] ss:$0 sm:$0xff] }
  0x34   :  { %590 = vmatprep.subr.bf16.mxu0 %v734_v0 }
  0x36   :  { %575 = vmatpush3.bf16.msra.mxu1 %v642_v9 }
  0x37   :  { %576 = vmatprep.subr.bf16.mxu1 %v734_v0  ;;  %591 = vmatpush3.bf16.msra.mxu0 %v648_v15 }
  0x38   :  { %592 = vmatprep.subr.bf16.mxu0 %v734_v0 }
  0x3a   :  { %577 = vmatpush3.bf16.msra.mxu1 %v643_v10 }
  0x3b   :  { %578 = vmatprep.subr.bf16.mxu1 %v734_v0  ;;  %593 = vmatpush3.bf16.msra.mxu0 %v649_v16 }
  0x3c   :  { %594 = vmatprep.subr.bf16.mxu0 %v734_v0 }
  0x3e   :  { %579 = vmatpush3.bf16.msra.mxu1 %v644_v11 }
  0x3f   :  { %580 = vmatprep.subr.bf16.mxu1 %v734_v0  ;;  %595 = vmatpush3.bf16.msra.mxu0 %v650_v17 }
  0x40   :  { %596 = vmatprep.subr.bf16.mxu0 %v734_v0 }
  0x42   :  { %581 = vmatpush3.bf16.msra.mxu1 %v645_v12 }
  0x43   :  { %582 = vmatprep.subr.bf16.mxu1 %v734_v0  ;;  %597 = vmatpush3.bf16.msra.mxu0 %v651_v18 }
  0x44   :  { %598 = vmatprep.subr.bf16.mxu0 %v734_v0 }
  0x46   :  { %583 = vmatpush3.bf16.msra.mxu1 %v646_v13 }
  0x47   :  { %608 = vmatprep.subr.bf16.mxu1 %v734_v0  ;;  %599 = vmatpush3.bf16.msra.mxu0 %v652_v29 }
  0x48   :  { %600 = vmatprep.subr.bf16.mxu0 %v734_v0 }
  0x4b   :  { %601 = vmatpush3.bf16.msra.mxu0 %v653_v30 }
  0x4c   :  { %602 = vmatprep.subr.bf16.mxu0 %v734_v0 }
  0x4f   :  { %603 = vmatpush3.bf16.msra.mxu0 %v654_v31 }
  0xf1   :  { %v138_v20 = vpop.f32.mrf.mxu0 }
  0xf2   :  { %v139_v22 = vadd.f32 %v499_v19, %v138_v20 }
  0xf3   :  { %v566_v21 = vpop.f32.mrf.mxu0 }
  0xf4   :  { %v145_v26 = vmax.f32 %v139_v22, 0.0 }
  0xf5   :  { %v141_v23 = vpop.f32.mrf.mxu0 }
  0xf6   :  { %v142_v24 = vadd.f32 %v499_v19, %v141_v23 }
  0xf7   :  { %v567_v25 = vpop.f32.mrf.mxu0 }
  0xf8   :  { %v146_v27 = vmax.f32 %v142_v24, 0.0 }
  0xfa   :  { %v147_v28 = vpack.c.bf16 %v146_v27, %v145_v26 }
  0xfc   :  { %585 = vmatmul.mubr.bf16.vlgmr.msra.gmra.mxu1 %v147_v28 }
  0xfd   :  { %624 = vmatprep.mubr.msk.bf16.mxu1 %vm735_vm0, %v734_v0  ;;  %609 = vmatpush3.bf16.msra.mxu1 %v655_v32 }
  0xfe   :  { %610 = vmatprep.subr.bf16.mxu1 %v734_v0 }
 0x101   :  { %611 = vmatpush3.bf16.msra.mxu1 %v656_v33 }
 0x102   :  { %612 = vmatprep.subr.bf16.mxu1 %v734_v0 }
 0x105   :  { %613 = vmatpush3.bf16.msra.mxu1 %v657_v34 }
 0x106   :  { %614 = vmatprep.subr.bf16.mxu1 %v734_v0 }
 0x109   :  { %615 = vmatpush3.bf16.msra.mxu1 %v658_v35 }
 0x10a   :  { %616 = vmatprep.subr.bf16.mxu1 %v734_v0 }
 0x10d   :  { %617 = vmatpush3.bf16.msra.mxu1 %v659_v36 }
 0x10e   :  { %618 = vmatprep.subr.bf16.mxu1 %v734_v0 }
 0x111   :  { %619 = vmatpush3.bf16.msra.mxu1 %v660_v47 }
 0x112   :  { %620 = vmatprep.subr.bf16.mxu1 %v734_v0 }
 0x115   :  { %621 = vmatpush3.bf16.msra.mxu1 %v661_v48 }
 0x116   :  { %622 = vmatprep.subr.bf16.mxu1 %v734_v0 }
 0x119   :  { %623 = vmatpush3.bf16.msra.mxu1 %v662_v49 }
 0x1bc   :  { %v253_v38 = vpop.f32.mrf.mxu1 }
 0x1bd   :  { %v254_v40 = vadd.f32 %v503_v37, %v253_v38 }
 0x1be   :  { %v586_v39 = vpop.f32.mrf.mxu1 }
 0x1bf   :  { %v260_v44 = vmax.f32 %v254_v40, 0.0 }
 0x1c0   :  { %v256_v41 = vpop.f32.mrf.mxu1 }
 0x1c1   :  { %v257_v42 = vadd.f32 %v503_v37, %v256_v41 }
 0x1c2   :  { %v587_v43 = vpop.f32.mrf.mxu1 }
 0x1c3   :  { %v261_v45 = vmax.f32 %v257_v42, 0.0 }
 0x1c5   :  { %v262_v46 = vpack.c.bf16 %v261_v45, %v260_v44 }
 0x1c7   :  { %605 = vmatmul.mubr.bf16.vlgmr.msra.gmra.mxu0 %v262_v46 }
 0x287   :  { %v368_v51 = vpop.f32.mrf.mxu0 }
 0x288   :  { %v369_v53 = vadd.f32 %v512_v50, %v368_v51 }
 0x289   :  { %v606_v52 = vpop.f32.mrf.mxu0 }
 0x28a   :  { %v375_v57 = vmax.f32 %v369_v53, 0.0 }
 0x28b   :  { %v371_v54 = vpop.f32.mrf.mxu0 }
 0x28c   :  { %v372_v55 = vadd.f32 %v512_v50, %v371_v54 }
 0x28d   :  { %v607_v56 = vpop.f32.mrf.mxu0 }
 0x28e   :  { %v376_v58 = vmax.f32 %v372_v55, 0.0 }
 0x290   :  { %v377_v59 = vpack.c.bf16 %v376_v58, %v375_v57 }
 0x292   :  { %625 = vmatmul.mubr.bf16.vlgmr.msra.gmra.mxu1 %v377_v59 }
 0x352   :  { %v483_v61 = vpop.f32.mrf.mxu1 }
 0x353   :  { %v484_v62 = vadd.f32 %v521_v60, %v483_v61 }
 0x354   :  { %v626_v63 = vpop.f32.mrf.mxu1 }
 0x355   :  { %491 = vst.msk [vmem:[%s904_s9] sm:$0xff] %vm490_vm2, %v484_v62 }
 0x356   :  { %v486_v0 = vpop.f32.mrf.mxu1 }
 0x357   :  { %v487_v1 = vadd.f32 %v521_v60, %v486_v0 }
 0x358   :  { %v627_v2 = vpop.f32.mrf.mxu1 }
 0x359   :  { %492 = vst.msk [vmem:[%s904_s9 + $0x8] sm:$0xff] %vm490_vm2, %v487_v1 }
 0x35a   :  { %497 = vsyncpa [#allocation3], 1 }
 0x35b   :  { %498 = vsyncpa [#allocation5], 1 }

</bundles_post_ra>
